<compile_context>
chip_gen: v5e
topology: v5e:2x2
jax: 0.10.0
libtpu: 0.0.40
codegen_flags: <defaults>
</compile_context>

<pallas_src>
import functools

import jax
import jax.numpy as jnp
from jax.experimental import pallas as pl
from jax.experimental.pallas import tpu as pltpu

_DIMS = [14, 512, 256, 128, 64, 2]
_OUT_PAD = 128  # lane-dense padded width of the final projection


def _round_up(n, m):
    return ((n + m - 1) // m) * m


def _default_tanh_dtype():
    """bf16 tanh on v6e/v7x (bf16 EUP path), f32 tanh on v5e and older."""
    try:
        kind = jax.devices()[0].device_kind.lower()
    except Exception:  # pragma: no cover - fall back to the always-safe path
        return jnp.float32
    if any(tag in kind for tag in ("v2", "v3", "v4", "v5")):
        return jnp.float32
    return jnp.bfloat16


def _mlp_kernel(x_ref,
                w1_ref, b1_ref,
                w2_ref, b2_ref,
                w3_ref, b3_ref,
                w4_ref, b4_ref,
                w5_ref, b5_ref,
                o_ref, *, tanh_dtype):
    def hidden(h, w_ref, b_ref):
        # bf16 operands on the MXU, f32 accumulation; BN is pre-folded into w/b.
        z = jnp.dot(h.astype(jnp.bfloat16), w_ref[...],
                    preferred_element_type=jnp.float32) + b_ref[...]
        # tanh in bf16 on v6e/v7x (result feeds the next bf16 MXU operand anyway),
        # f32 on v5e.
        return jnp.tanh(z.astype(tanh_dtype))

    # TODO(synk): Dropout(p=0.01) is modeled in eval mode (identity); training-mode
    # RNG masking is not implemented.
    h = x_ref[...]
    h = hidden(h, w1_ref, b1_ref)
    h = hidden(h, w2_ref, b2_ref)
    h = hidden(h, w3_ref, b3_ref)
    h = hidden(h, w4_ref, b4_ref)
    logits = jnp.dot(h.astype(jnp.bfloat16), w5_ref[...],
                     preferred_element_type=jnp.float32) + b5_ref[...]
    # Lane-dense (tm, 128) bf16 store; padded lanes are sliced off in the wrapper.
    o_ref[...] = jax.nn.sigmoid(logits).astype(o_ref.dtype)


def net_forward(x, params, tm=1024, tanh_dtype=None):
    """x: (B, 14) float32 -> (B, 2) float32."""
    if tanh_dtype is None:
        tanh_dtype = _default_tanh_dtype()

    B = x.shape[0]
    b_pad8 = _round_up(B, 8)
    # Tile height: multiple of 8, no larger than the (8-rounded) batch.
    tm = max(8, min(_round_up(tm, 8), b_pad8))
    # Guarantee >= 2 grid steps when the batch allows it, so the "parallel" batch
    # axis can shard across both v7x TensorCores (no-op on single-TC v5e/v6e).
    if b_pad8 // tm < 2 and b_pad8 >= 16:
        tm = _round_up(b_pad8 // 2, 8)

    b_pad = _round_up(B, tm)
    if b_pad != B:
        x = jnp.pad(x, ((0, b_pad - B), (0, 0)))
    grid = (b_pad // tm,)

    # x / out are batch-tiled (auto double-buffered by Pallas); all parameters use
    # full-shape constant-index BlockSpecs and stay VMEM-resident across grid steps.
    x_spec = pl.BlockSpec((tm, _DIMS[0]), lambda i: (i, 0))
    param_specs = [pl.BlockSpec(p.shape, lambda i: (0, 0)) for p in params]
    out_spec = pl.BlockSpec((tm, _OUT_PAD), lambda i: (i, 0))

    # Advisory cost estimate for XLA scheduling around the custom call.
    flops_per_row = 2 * (14 * 512 + 512 * 256 + 256 * 128 + 128 * 64 + 64 * _OUT_PAD)
    transc_per_row = 512 + 256 + 128 + 64 + _OUT_PAD
    weight_bytes = int(sum(p.size * p.dtype.itemsize for p in params))
    cost = pl.CostEstimate(
        flops=int(b_pad * flops_per_row),
        transcendentals=int(b_pad * transc_per_row),
        bytes_accessed=int(b_pad * (_DIMS[0] * 4 + _OUT_PAD * 2) + weight_bytes),
    )

    out = pl.pallas_call(
        functools.partial(_mlp_kernel, tanh_dtype=tanh_dtype),
        out_shape=jax.ShapeDtypeStruct((b_pad, _OUT_PAD), jnp.bfloat16),
        grid=grid,
        in_specs=[x_spec] + param_specs,
        out_specs=out_spec,
        compiler_params=pltpu.CompilerParams(
            dimension_semantics=("parallel",),  # megacore sharding on v7x
            vmem_limit_bytes=48 << 20,          # headroom over v5e's 16 MiB default,
                                                # still < v7x's 64 MiB physical VMEM
        ),
        cost_estimate=cost,
    )(x, *params)
    return out[:B, :2].astype(jnp.float32)


def init_params(key):
    """Deterministic synthetic parameters matching the PyTorch module's shapes.

    Eval-mode BatchNorm1d (gamma, beta, running stats) is folded -- in f32 -- into the
    next layer's weights/biases; weights are then stored bf16 (MXU operands) and the
    final layer is zero-padded 2 -> 128 output columns for a lane-dense store.
    """
    eps = 1e-5
    keys = jax.random.split(key, 5 * 6)
    ki = iter(range(len(keys)))

    Ws, bs, bn = [], [], []
    for layer in range(5):
        fan_in, fan_out = _DIMS[layer], _DIMS[layer + 1]
        bound = 1.0 / float(fan_in) ** 0.5
        w = jax.random.uniform(keys[next(ki)], (fan_in, fan_out),
                               minval=-bound, maxval=bound, dtype=jnp.float32)
        b = jax.random.uniform(keys[next(ki)], (1, fan_out),
                               minval=-bound, maxval=bound, dtype=jnp.float32)
        Ws.append(w)
        bs.append(b)
        if layer < 4:  # BatchNorm1d after fc1..fc4
            gamma = jax.random.uniform(keys[next(ki)], (fan_out,),
                                       minval=0.5, maxval=1.5, dtype=jnp.float32)
            beta = 0.1 * jax.random.normal(keys[next(ki)], (fan_out,), dtype=jnp.float32)
            run_mean = 0.1 * jax.random.normal(keys[next(ki)], (fan_out,), dtype=jnp.float32)
            run_var = jax.random.uniform(keys[next(ki)], (fan_out,),
                                         minval=0.5, maxval=1.5, dtype=jnp.float32)
            scale = gamma / jnp.sqrt(run_var + eps)
            shift = beta - run_mean * scale
            bn.append((scale, shift))

    # Fold eval-mode BN_l (applied after tanh of fc_l) into fc_{l+1}:
    #   (tanh*s + t) @ W + b  ==  tanh @ (s[:,None] * W) + (t @ W + b)
    for l in range(4):
        s, t = bn[l]
        bs[l + 1] = bs[l + 1] + t.reshape(1, -1) @ Ws[l + 1]
        Ws[l + 1] = s.reshape(-1, 1) * Ws[l + 1]

    # Zero-pad the final projection 2 -> 128 output lanes (unmasked output store).
    Ws[4] = jnp.pad(Ws[4], ((0, 0), (0, _OUT_PAD - _DIMS[5])))
    bs[4] = jnp.pad(bs[4], ((0, 0), (0, _OUT_PAD - _DIMS[5])))

    flat = []
    for w, b in zip(Ws, bs):
        flat += [w.astype(jnp.bfloat16), b]  # weights bf16, biases f32
    return flat


def net_forward_ref(x, params, tanh_dtype=None):
    """Pure-JAX reference with the same folded-BN / bf16-operand / f32-accum math."""
    if tanh_dtype is None:
        tanh_dtype = _default_tanh_dtype()
    w1, b1, w2, b2, w3, b3, w4, b4, w5, b5 = params
    h = x
    for w, b in ((w1, b1), (w2, b2), (w3, b3), (w4, b4)):
        z = jnp.dot(h.astype(jnp.bfloat16), w, preferred_element_type=jnp.float32) + b
        h = jnp.tanh(z.astype(tanh_dtype))
    logits = jnp.dot(h.astype(jnp.bfloat16), w5, preferred_element_type=jnp.float32) + b5
    return jax.nn.sigmoid(logits).astype(jnp.bfloat16)[:, :2].astype(jnp.float32)


if __name__ == "__main__":
    key = jax.random.PRNGKey(0)
    k_x1, k_x2, k_p = jax.random.split(key, 3)
    params = init_params(k_p)

    # Output is bf16-quantized and tanh may run in bf16 on v6e/v7x, so compare with a
    # tolerance a few bf16 ulps wide against the bf16-matched reference.
    tol = 2e-2

    # Case 1: batch not a multiple of 8, default tm (auto-clamped to >= 2 grid steps).
    B1 = 37
    x1 = jax.random.normal(k_x1, (B1, 14), dtype=jnp.float32)
    fwd1 = jax.jit(functools.partial(net_forward, tm=1024))
    out1 = jax.block_until_ready(fwd1(x1, params))
    ref1 = net_forward_ref(x1, params)
    assert out1.shape == (B1, 2)
    assert jnp.allclose(out1, ref1, atol=tol, rtol=tol), "mismatch vs JAX reference (case 1)"

    # Case 2: larger batch, explicit smaller tile -> several grid steps.
    B2 = 300
    x2 = jax.random.normal(k_x2, (B2, 14), dtype=jnp.float32)
    fwd2 = jax.jit(functools.partial(net_forward, tm=128))
    out2 = jax.block_until_ready(fwd2(x2, params))
    ref2 = net_forward_ref(x2, params)
    assert out2.shape == (B2, 2)
    assert jnp.allclose(out2, ref2, atol=tol, rtol=tol), "mismatch vs JAX reference (case 2)"

    print("KERNEL_OK")
</pallas_src>

<mosaic_0001>
module attributes {stable_mosaic.version = 11 : i64} {
  func.func @_mlp_kernel(%arg0: i32, %arg1: memref<24x14xf32, #tpu.memory_space<vmem>>, %arg2: memref<14x512xbf16, #tpu.memory_space<vmem>>, %arg3: memref<1x512xf32, #tpu.memory_space<vmem>>, %arg4: memref<512x256xbf16, #tpu.memory_space<vmem>>, %arg5: memref<1x256xf32, #tpu.memory_space<vmem>>, %arg6: memref<256x128xbf16, #tpu.memory_space<vmem>>, %arg7: memref<1x128xf32, #tpu.memory_space<vmem>>, %arg8: memref<128x64xbf16, #tpu.memory_space<vmem>>, %arg9: memref<1x64xf32, #tpu.memory_space<vmem>>, %arg10: memref<64x128xbf16, #tpu.memory_space<vmem>>, %arg11: memref<1x128xf32, #tpu.memory_space<vmem>>, %arg12: memref<24x128xbf16, #tpu.memory_space<vmem>>) attributes {dimension_semantics = [#tpu.dimension_semantics<parallel>], iteration_bounds = array<i64: 2>, scalar_prefetch = 0 : i64, scratch_operands = 0 : i64, tpu.core_type = #tpu.core_type<tc>, window_params = [{transform_indices = @transform_0, window_bounds = array<i64: 24, 14>}, {pipeline_mode = #tpu.pipeline_mode<synchronous>, transform_indices = @transform_1, window_bounds = array<i64: 14, 512>}, {pipeline_mode = #tpu.pipeline_mode<synchronous>, transform_indices = @transform_2, window_bounds = array<i64: 1, 512>}, {pipeline_mode = #tpu.pipeline_mode<synchronous>, transform_indices = @transform_3, window_bounds = array<i64: 512, 256>}, {pipeline_mode = #tpu.pipeline_mode<synchronous>, transform_indices = @transform_4, window_bounds = array<i64: 1, 256>}, {pipeline_mode = #tpu.pipeline_mode<synchronous>, transform_indices = @transform_5, window_bounds = array<i64: 256, 128>}, {pipeline_mode = #tpu.pipeline_mode<synchronous>, transform_indices = @transform_6, window_bounds = array<i64: 1, 128>}, {pipeline_mode = #tpu.pipeline_mode<synchronous>, transform_indices = @transform_7, window_bounds = array<i64: 128, 64>}, {pipeline_mode = #tpu.pipeline_mode<synchronous>, transform_indices = @transform_8, window_bounds = array<i64: 1, 64>}, {pipeline_mode = #tpu.pipeline_mode<synchronous>, transform_indices = @transform_9, window_bounds = array<i64: 64, 128>}, {pipeline_mode = #tpu.pipeline_mode<synchronous>, transform_indices = @transform_10, window_bounds = array<i64: 1, 128>}, {transform_indices = @transform_11, window_bounds = array<i64: 24, 128>}]} {
    %c0 = arith.constant 0 : index
    %c0_0 = arith.constant 0 : index
    %0 = vector.load %arg1[%c0, %c0_0] : memref<24x14xf32, #tpu.memory_space<vmem>>, vector<24x14xf32>
    %1 = arith.truncf %0 : vector<24x14xf32> to vector<24x14xbf16>
    %c0_1 = arith.constant 0 : index
    %c0_2 = arith.constant 0 : index
    %2 = vector.load %arg2[%c0_1, %c0_2] : memref<14x512xbf16, #tpu.memory_space<vmem>>, vector<14x512xbf16>
    %cst = arith.constant dense<0.000000e+00> : vector<24x512xf32>
    %3 = tpu.matmul %1, %2, %cst {dimension_numbers = #tpu.dot_dimension_numbers<[1], [0], [0], [1], [0, 0, 1, 1], [], []>} : vector<24x14xbf16>, vector<14x512xbf16>, vector<24x512xf32> -> vector<24x512xf32>
    %c0_3 = arith.constant 0 : index
    %c0_4 = arith.constant 0 : index
    %4 = vector.load %arg3[%c0_3, %c0_4] : memref<1x512xf32, #tpu.memory_space<vmem>>, vector<1x512xf32>
    %5 = vector.broadcast %4 : vector<1x512xf32> to vector<24x512xf32>
    %6 = arith.addf %3, %5 : vector<24x512xf32>
    %7 = arith.truncf %6 : vector<24x512xf32> to vector<24x512xbf16>
    %8 = math.tanh %7 : vector<24x512xbf16>
    %c0_5 = arith.constant 0 : index
    %c0_6 = arith.constant 0 : index
    %9 = vector.load %arg4[%c0_5, %c0_6] : memref<512x256xbf16, #tpu.memory_space<vmem>>, vector<512x256xbf16>
    %cst_7 = arith.constant dense<0.000000e+00> : vector<24x256xf32>
    %10 = tpu.matmul %8, %9, %cst_7 {dimension_numbers = #tpu.dot_dimension_numbers<[1], [0], [0], [1], [0, 0, 1, 1], [], []>} : vector<24x512xbf16>, vector<512x256xbf16>, vector<24x256xf32> -> vector<24x256xf32>
    %c0_8 = arith.constant 0 : index
    %c0_9 = arith.constant 0 : index
    %11 = vector.load %arg5[%c0_8, %c0_9] : memref<1x256xf32, #tpu.memory_space<vmem>>, vector<1x256xf32>
    %12 = vector.broadcast %11 : vector<1x256xf32> to vector<24x256xf32>
    %13 = arith.addf %10, %12 : vector<24x256xf32>
    %14 = arith.truncf %13 : vector<24x256xf32> to vector<24x256xbf16>
    %15 = math.tanh %14 : vector<24x256xbf16>
    %c0_10 = arith.constant 0 : index
    %c0_11 = arith.constant 0 : index
    %16 = vector.load %arg6[%c0_10, %c0_11] : memref<256x128xbf16, #tpu.memory_space<vmem>>, vector<256x128xbf16>
    %cst_12 = arith.constant dense<0.000000e+00> : vector<24x128xf32>
    %17 = tpu.matmul %15, %16, %cst_12 {dimension_numbers = #tpu.dot_dimension_numbers<[1], [0], [0], [1], [0, 0, 1, 1], [], []>} : vector<24x256xbf16>, vector<256x128xbf16>, vector<24x128xf32> -> vector<24x128xf32>
    %c0_13 = arith.constant 0 : index
    %c0_14 = arith.constant 0 : index
    %18 = vector.load %arg7[%c0_13, %c0_14] : memref<1x128xf32, #tpu.memory_space<vmem>>, vector<1x128xf32>
    %19 = vector.broadcast %18 : vector<1x128xf32> to vector<24x128xf32>
    %20 = arith.addf %17, %19 : vector<24x128xf32>
    %21 = arith.truncf %20 : vector<24x128xf32> to vector<24x128xbf16>
    %22 = math.tanh %21 : vector<24x128xbf16>
    %c0_15 = arith.constant 0 : index
    %c0_16 = arith.constant 0 : index
    %23 = vector.load %arg8[%c0_15, %c0_16] : memref<128x64xbf16, #tpu.memory_space<vmem>>, vector<128x64xbf16>
    %cst_17 = arith.constant dense<0.000000e+00> : vector<24x64xf32>
    %24 = tpu.matmul %22, %23, %cst_17 {dimension_numbers = #tpu.dot_dimension_numbers<[1], [0], [0], [1], [0, 0, 1, 1], [], []>} : vector<24x128xbf16>, vector<128x64xbf16>, vector<24x64xf32> -> vector<24x64xf32>
    %c0_18 = arith.constant 0 : index
    %c0_19 = arith.constant 0 : index
    %25 = vector.load %arg9[%c0_18, %c0_19] : memref<1x64xf32, #tpu.memory_space<vmem>>, vector<1x64xf32>
    %26 = vector.broadcast %25 : vector<1x64xf32> to vector<24x64xf32>
    %27 = arith.addf %24, %26 : vector<24x64xf32>
    %28 = arith.truncf %27 : vector<24x64xf32> to vector<24x64xbf16>
    %29 = math.tanh %28 : vector<24x64xbf16>
    %c0_20 = arith.constant 0 : index
    %c0_21 = arith.constant 0 : index
    %30 = vector.load %arg10[%c0_20, %c0_21] : memref<64x128xbf16, #tpu.memory_space<vmem>>, vector<64x128xbf16>
    %cst_22 = arith.constant dense<0.000000e+00> : vector<24x128xf32>
    %31 = tpu.matmul %29, %30, %cst_22 {dimension_numbers = #tpu.dot_dimension_numbers<[1], [0], [0], [1], [0, 0, 1, 1], [], []>} : vector<24x64xbf16>, vector<64x128xbf16>, vector<24x128xf32> -> vector<24x128xf32>
    %c0_23 = arith.constant 0 : index
    %c0_24 = arith.constant 0 : index
    %32 = vector.load %arg11[%c0_23, %c0_24] : memref<1x128xf32, #tpu.memory_space<vmem>>, vector<1x128xf32>
    %33 = vector.broadcast %32 : vector<1x128xf32> to vector<24x128xf32>
    %34 = arith.addf %31, %33 : vector<24x128xf32>
    %35 = arith.negf %34 : vector<24x128xf32>
    %36 = math.exp %35 : vector<24x128xf32>
    %cst_25 = arith.constant 1.000000e+00 : f32
    %37 = vector.broadcast %cst_25 : f32 to vector<24x128xf32>
    %38 = arith.addf %37, %36 : vector<24x128xf32>
    %39 = arith.divf %37, %38 : vector<24x128xf32>
    %40 = arith.truncf %39 : vector<24x128xf32> to vector<24x128xbf16>
    %c0_26 = arith.constant 0 : index
    %c0_27 = arith.constant 0 : index
    %41 = vector.load %arg12[%c0_26, %c0_27] : memref<24x128xbf16, #tpu.memory_space<vmem>>, vector<24x128xbf16>
    tpu.vector_store %arg12[%c0_26, %c0_27], %40 {strides = array<i32>} : memref<24x128xbf16, #tpu.memory_space<vmem>>, vector<24x128xbf16>,
    return
  }
  func.func @transform_0(%arg0: i32) -> (i32, i32) {
    %c0_i32 = arith.constant 0 : i32
    %c0_i32_0 = arith.constant 0 : i32
    return %arg0, %c0_i32 : i32, i32
  }
  func.func @transform_1(%arg0: i32) -> (i32, i32) {
    %c0_i32 = arith.constant 0 : i32
    %c0_i32_0 = arith.constant 0 : i32
    %c0_i32_1 = arith.constant 0 : i32
    return %c0_i32, %c0_i32_0 : i32, i32
  }
  func.func @transform_2(%arg0: i32) -> (i32, i32) {
    %c0_i32 = arith.constant 0 : i32
    %c0_i32_0 = arith.constant 0 : i32
    %c0_i32_1 = arith.constant 0 : i32
    return %c0_i32, %c0_i32_0 : i32, i32
  }
  func.func @transform_3(%arg0: i32) -> (i32, i32) {
    %c0_i32 = arith.constant 0 : i32
    %c0_i32_0 = arith.constant 0 : i32
    %c0_i32_1 = arith.constant 0 : i32
    return %c0_i32, %c0_i32_0 : i32, i32
  }
  func.func @transform_4(%arg0: i32) -> (i32, i32) {
    %c0_i32 = arith.constant 0 : i32
    %c0_i32_0 = arith.constant 0 : i32
    %c0_i32_1 = arith.constant 0 : i32
    return %c0_i32, %c0_i32_0 : i32, i32
  }
  func.func @transform_5(%arg0: i32) -> (i32, i32) {
    %c0_i32 = arith.constant 0 : i32
    %c0_i32_0 = arith.constant 0 : i32
    %c0_i32_1 = arith.constant 0 : i32
    return %c0_i32, %c0_i32_0 : i32, i32
  }
  func.func @transform_6(%arg0: i32) -> (i32, i32) {
    %c0_i32 = arith.constant 0 : i32
    %c0_i32_0 = arith.constant 0 : i32
    %c0_i32_1 = arith.constant 0 : i32
    return %c0_i32, %c0_i32_0 : i32, i32
  }
  func.func @transform_7(%arg0: i32) -> (i32, i32) {
    %c0_i32 = arith.constant 0 : i32
    %c0_i32_0 = arith.constant 0 : i32
    %c0_i32_1 = arith.constant 0 : i32
    return %c0_i32, %c0_i32_0 : i32, i32
  }
  func.func @transform_8(%arg0: i32) -> (i32, i32) {
    %c0_i32 = arith.constant 0 : i32
    %c0_i32_0 = arith.constant 0 : i32
    %c0_i32_1 = arith.constant 0 : i32
    return %c0_i32, %c0_i32_0 : i32, i32
  }
  func.func @transform_9(%arg0: i32) -> (i32, i32) {
    %c0_i32 = arith.constant 0 : i32
    %c0_i32_0 = arith.constant 0 : i32
    %c0_i32_1 = arith.constant 0 : i32
    return %c0_i32, %c0_i32_0 : i32, i32
  }
  func.func @transform_10(%arg0: i32) -> (i32, i32) {
    %c0_i32 = arith.constant 0 : i32
    %c0_i32_0 = arith.constant 0 : i32
    %c0_i32_1 = arith.constant 0 : i32
    return %c0_i32, %c0_i32_0 : i32, i32
  }
  func.func @transform_11(%arg0: i32) -> (i32, i32) {
    %c0_i32 = arith.constant 0 : i32
    %c0_i32_0 = arith.constant 0 : i32
    return %arg0, %c0_i32 : i32, i32
  }
}

</mosaic_0001>

<bundles_post_ra>
// kernel: net_forward.1
= control target key start
LH: loop header
LB: loop body
LE: loop exit
PB: predicated region body
PF: predicated region fallthrough
CT: control target
= control target key end

     0   :  { %16 = vsyncpa [#allocation3], 0  ;;  %s2293_s17 = smov 0   ;;  %s2477_s0 = inlined_call_operand.vmem [shape: f32[48,14], index: 0, kind: input, shape index: {}]   ;;  %s2478_s1 = inlined_call_operand.vmem [shape: bf16[14,512], index: 1, kind: input, shape index: {}]   ;;  %s2479_s2 = inlined_call_operand.vmem [shape: f32[1,512], index: 2, kind: input, shape index: {}]   ;;  %s2480_s3 = inlined_call_operand.hbm [shape: bf16[512,256], index: 3, kind: input, shape index: {}]   ;;  %s2481_s4 = inlined_call_operand.vmem [shape: f32[1,256], index: 4, kind: input, shape index: {}]   ;;  %s2482_s5 = inlined_call_operand.vmem [shape: bf16[256,128], index: 5, kind: input, shape index: {}]   ;;  %s2483_s6 = inlined_call_operand.vmem [shape: f32[1,128], index: 6, kind: input, shape index: {}]   ;;  %s2484_s7 = inlined_call_operand.vmem [shape: bf16[128,64], index: 7, kind: input, shape index: {}]   ;;  %s2485_s8 = inlined_call_operand.vmem [shape: f32[1,64], index: 8, kind: input, shape index: {}]   ;;  %s2486_s9 = inlined_call_operand.vmem [shape: bf16[64,128], index: 9, kind: input, shape index: {}]   ;;  %s2487_s10 = inlined_call_operand.vmem [shape: f32[1,128], index: 10, kind: input, shape index: {}]   ;;  %s2488_s11 = inlined_call_operand.vmem [shape: bf16[48,128], index: 11, kind: output, shape index: {}]  }
   0x1 LB: > { %s306_s20 = sshll.u32 %s2480_s3, 4  ;;  %s1595_s21 = sadd.s32 4294967295, %s2228_s17   ;;  %s2228_s17 = sphi %s2293_s17, %s22_s17   ;;  %s307_s20 = int_to_ptr.hbm [resolvable:$true] %s306_s20 }
   0x2   : > { %p1597_p0 = scmp.ge.s32.totalorder %s2228_s17, 1  ;;  %p289_p1 = scmp.lt.s32.totalorder %s2228_s17, 3 }
   0x3   : > { %p2112_p2 = scmp.eq.s32.totalorder %s1595_s21, 0  ;;  %s2230_s22 = smov [#allocation2]  }
   0x4   : > { %p290_p3 = pnand %p1597_p0, %p289_p1  ;;  %s308_s23 = sshll.u32 %s2230_s22, 4  ;;  %s309_s23 = int_to_ptr.vmem [resolvable:$true] %s308_s23 }
   0x5   : > { %s2231_s24 = smov 128   ;;  %s2232_s25 = smov 8  }
   0x6   : > { %p2108_p4 = pneg %p290_p3  ;;  %354 = sbr.rel (%p290_p3) target bundleno = 856 (0x358), region = 64 }
   0x8   : > { %p2109_p5 = pnand %p2112_p2, %p2108_p4 }
   0xa   : > { %2111 = dma.hbm_to_vmem [thread:$0]  (!%p2109_p5), %s307_s20, 8192, %s309_s23, [#allocation3], %s2231_s24, %s2231_s24, %s2232_s25  }
   0xb   : > { %2223 = dma.done.wait (%p2112_p2), [#allocation3], 8192  }
   0xc   : > { %2225 = vsyncadd (%p2112_p2), [#allocation3], 4294959104  ;;  %s395_s26 = smul.u32 3, %s1595_s21  ;;  %vm450_vm0 = vcmask 1046528   ;;  %v1606_v0 = vld [vmem:[%s2478_s1] sm:$0xf] }
   0xd   : > { %v2005_v1 = vld [vmem:[%s2478_s1 + $0xc] sm:$0x70]  ;;  %v2003_v2 = vld [vmem:[%s2478_s1 + $0x4] sm:$0xf]  ;;  %v1608_v4 = vld [vmem:[%s2478_s1 + $0x10] sm:$0x70] }
   0xe   : > { %p396_p6 = scmp.lt.s32.totalorder %s395_s26, 5  ;;  %v1607_v3 = vor.u32 %v2005_v1, %v1606_v0  ;;  %v1614_v5 = vld [vmem:[%s2478_s1 + $0x8] sm:$0xf]  ;;  %v2006_v6 = vld [vmem:[%s2478_s1 + $0x14] sm:$0x70]  ;;  %v1611_v7 = vor.u32 %v2003_v2, %v1608_v4  ;;  %vm443_vm1 = vcmask 113664  }
   0xf   : > { %v1615_v8 = vor.u32 %v2006_v6, %v1614_v5  ;;  %v2004_v9 = vld [vmem:[%s2478_s1 + $0xc] sm:$0xf]  ;;  %v1616_v10 = vld [vmem:[%s2478_s1 + $0x18] sm:$0x70]  ;;  %v1686_v15 = vld [vmem:[#allocation2 + $0x70] sm:$0xf] }
  0x10   : > { %s2490_s26 = smov (!%p396_p6, %s395_s26), 5  ;;  %v452_v12 = vsel %vm450_vm0, %v1607_v3, 0  ;;  %v1619_v13 = vor.u32 %v2004_v9, %v1616_v10  ;;  %v455_v16 = vsel %vm450_vm0, %v1611_v7, 0  ;;  %v2022_v19 = vld [vmem:[#allocation2 + $0x74] sm:$0xf0]  ;;  %vm1439_vm2 = vcmask 523264  }
  0x11   : > { %s1602_s27 = sshll.u32 %s2490_s26, 3  ;;  %470 = vmatpush.bf16.msra.mxu0 %v452_v12  ;;  %v458_v17 = vsel %vm450_vm0, %v1615_v8, 0  ;;  %v1750_v20 = vld [vmem:[#allocation2 + $0xf0] sm:$0xf]  ;;  %488 = vmatpush.bf16.msra.mxu1 %v455_v16  ;;  %v1687_v22 = vor.u32 %v2022_v19, %v1686_v15  ;;  %v2038_v23 = vld [vmem:[#allocation2 + $0xf4] sm:$0xf0] }
  0x12   : > { %s2319_s18 = scalar_lea.vmem %s2477_s0, %s1602_s27  ;;  %506 = vmatpush.bf16.msra.mxu2 %v458_v17  ;;  %v461_v21 = vsel %vm450_vm0, %v1619_v13, 0  ;;  %v1678_v24 = vld [vmem:[#allocation2 + $0x60] sm:$0xf]  ;;  %v1751_v25 = vor.u32 %v2038_v23, %v1750_v20  ;;  %v2020_v26 = vld [vmem:[#allocation2 + $0x64] sm:$0xf0]  ;;  %s1603_s28 = sshll.u32 %s2490_s26, 2 }
  0x13   : > { %v408_v11 = vld [vmem:[%s2319_s18] sm:$0xff]  ;;  %v409_v14 = vld [vmem:[%s2319_s18 + $0x8] sm:$0xff]  ;;  %524 = vmatpush.bf16.msra.mxu3 %v461_v21  ;;  %v1814_v29 = vld [vmem:[#allocation2 + $0x170] sm:$0xf]  ;;  %v1679_v34 = vor.u32 %v2020_v26, %v1678_v24  ;;  %s405_s12 = scalar_lea.vmem %s2488_s11, %s1603_s28 }
  0x14   : > { %v411_v18 = vpack.c.bf16 %v409_v14, %v408_v11  ;;  %v1742_v27 = vld [vmem:[#allocation2 + $0xe0] sm:$0xf]  ;;  %v2036_v28 = vld [vmem:[#allocation2 + $0xe4] sm:$0xf0]  ;;  %v2054_v30 = vld [vmem:[#allocation2 + $0x174] sm:$0xf0] }
  0x15   : > { %v1878_v31 = vld [vmem:[#allocation2 + $0x1f0] sm:$0xf]  ;;  %v1815_v32 = vor.u32 %v2054_v30, %v1814_v29  ;;  %v2070_v33 = vld [vmem:[#allocation2 + $0x1f4] sm:$0xf0]  ;;  %965 = vmatpush.bf16.msrb.mxu0 %v1687_v22  ;;  %983 = vmatpush.bf16.msrb.mxu1 %v1751_v25  ;;  %v1743_v36 = vor.u32 %v2036_v28, %v1742_v27  ;;  %v1806_v45 = vld [vmem:[#allocation2 + $0x160] sm:$0xf] }
  0x16   : > { %1620 = vmatmul.msk.bf16.vlgmr.msra.gmra.mxu0 %vm443_vm1, %v411_v18  ;;  %1622 = vmatmul.msk.bf16.vlgmr.msra.gmra.mxu1 %vm443_vm1, %v411_v18  ;;  %v1879_v35 = vor.u32 %v2070_v33, %v1878_v31  ;;  %v410_v37 = vld [vmem:[%s2319_s18 + $0x10] sm:$0xff]  ;;  %v2018_v40 = vld [vmem:[#allocation2 + $0x54] sm:$0xf0]  ;;  %v2052_v46 = vld [vmem:[#allocation2 + $0x164] sm:$0xf0] }
  0x17   : > { %1624 = vmatmul.msk.bf16.vlgmr.msra.gmra.mxu2 %vm443_vm1, %v411_v18  ;;  %1626 = vmatmul.msk.bf16.vlgmr.msra.gmra.mxu3 %vm443_vm1, %v411_v18  ;;  %v412_v38 = vpack.c.bf16 %v410_v37, %v410_v37  ;;  %v1670_v39 = vld [vmem:[#allocation2 + $0x50] sm:$0xf]  ;;  %v2034_v43 = vld [vmem:[#allocation2 + $0xd4] sm:$0xf0]  ;;  %v1870_v47 = vld [vmem:[#allocation2 + $0x1e0] sm:$0xf]  ;;  %v1807_v48 = vor.u32 %v2052_v46, %v1806_v45 }
  0x18   : > { %1001 = vmatpush.bf16.msrb.mxu2 %v1815_v32  ;;  %1019 = vmatpush.bf16.msrb.mxu3 %v1879_v35  ;;  %v1734_v41 = vld [vmem:[#allocation2 + $0xd0] sm:$0xf]  ;;  %v1671_v42 = vor.u32 %v2018_v40, %v1670_v39  ;;  %v2068_v49 = vld [vmem:[#allocation2 + $0x1e4] sm:$0xf0]  ;;  %v1662_v50 = vld [vmem:[#allocation2 + $0x40] sm:$0xf] }
  0x19   : > { %966 = vmatpush.bf16.msrb.mxu0 %v1679_v34  ;;  %984 = vmatpush.bf16.msrb.mxu1 %v1743_v36  ;;  %v1735_v44 = vor.u32 %v2034_v43, %v1734_v41  ;;  %v2016_v51 = vld [vmem:[#allocation2 + $0x44] sm:$0xf0]  ;;  %v1871_v52 = vor.u32 %v2068_v49, %v1870_v47  ;;  %v1726_v54 = vld [vmem:[#allocation2 + $0xc0] sm:$0xf]  ;;  %v1798_v57 = vld [vmem:[#allocation2 + $0x150] sm:$0xf] }
  0x1a   : > { %v1663_v53 = vor.u32 %v2016_v51, %v1662_v50  ;;  %v2032_v55 = vld [vmem:[#allocation2 + $0xc4] sm:$0xf0]  ;;  %v2050_v58 = vld [vmem:[#allocation2 + $0x154] sm:$0xf0]  ;;  %v1862_v59 = vld [vmem:[#allocation2 + $0x1d0] sm:$0xf] }
  0x1b   : > { %v1727_v56 = vor.u32 %v2032_v55, %v1726_v54  ;;  %v1799_v60 = vor.u32 %v2050_v58, %v1798_v57  ;;  %v2066_v61 = vld [vmem:[#allocation2 + $0x1d4] sm:$0xf0]  ;;  %v1654_v63 = vld [vmem:[#allocation2 + $0x30] sm:$0xf]  ;;  %v1790_v5 = vld [vmem:[#allocation2 + $0x140] sm:$0xf] }
  0x1c   : > { %1002 = vmatpush.bf16.msrb.mxu2 %v1807_v48  ;;  %1020 = vmatpush.bf16.msrb.mxu3 %v1871_v52  ;;  %v1863_v62 = vor.u32 %v2066_v61, %v1862_v59  ;;  %v2014_v0 = vld [vmem:[#allocation2 + $0x34] sm:$0xf0]  ;;  %v1718_v1 = vld [vmem:[#allocation2 + $0xb0] sm:$0xf]  ;;  %v2048_v6 = vld [vmem:[#allocation2 + $0x144] sm:$0xf0] }
  0x1d   : > { %967 = vmatpush.bf16.msrb.mxu0 %v1671_v42  ;;  %985 = vmatpush.bf16.msrb.mxu1 %v1735_v44  ;;  %v1655_v2 = vor.u32 %v2014_v0, %v1654_v63  ;;  %v2030_v3 = vld [vmem:[#allocation2 + $0xb4] sm:$0xf0]  ;;  %v1854_v7 = vld [vmem:[#allocation2 + $0x1c0] sm:$0xf]  ;;  %v1791_v8 = vor.u32 %v2048_v6, %v1790_v5  ;;  %v2064_v9 = vld [vmem:[#allocation2 + $0x1c4] sm:$0xf0] }
  0x1e   : > { %v1719_v4 = vor.u32 %v2030_v3, %v1718_v1  ;;  %v1855_v10 = vor.u32 %v2064_v9, %v1854_v7  ;;  %v1646_v11 = vld [vmem:[#allocation2 + $0x20] sm:$0xf]  ;;  %v2012_v12 = vld [vmem:[#allocation2 + $0x24] sm:$0xf0]  ;;  %v1782_v17 = vld [vmem:[#allocation2 + $0x130] sm:$0xf] }
  0x1f   : > { %v1710_v13 = vld [vmem:[#allocation2 + $0xa0] sm:$0xf]  ;;  %v1647_v14 = vor.u32 %v2012_v12, %v1646_v11  ;;  %v2028_v15 = vld [vmem:[#allocation2 + $0xa4] sm:$0xf0]  ;;  %v2046_v18 = vld [vmem:[#allocation2 + $0x134] sm:$0xf0] }
  0x20   : > { %1003 = vmatpush.bf16.msrb.mxu2 %v1799_v60  ;;  %1021 = vmatpush.bf16.msrb.mxu3 %v1863_v62  ;;  %v1711_v16 = vor.u32 %v2028_v15, %v1710_v13  ;;  %v1846_v19 = vld [vmem:[#allocation2 + $0x1b0] sm:$0xf]  ;;  %v1783_v20 = vor.u32 %v2046_v18, %v1782_v17  ;;  %v2062_v21 = vld [vmem:[#allocation2 + $0x1b4] sm:$0xf0]  ;;  %v1774_v29 = vld [vmem:[#allocation2 + $0x120] sm:$0xf] }
  0x21   : > { %968 = vmatpush.bf16.msrb.mxu0 %v1663_v53  ;;  %986 = vmatpush.bf16.msrb.mxu1 %v1727_v56  ;;  %v1847_v22 = vor.u32 %v2062_v21, %v1846_v19  ;;  %v1638_v23 = vld [vmem:[#allocation2 + $0x10] sm:$0xf]  ;;  %v2010_v24 = vld [vmem:[#allocation2 + $0x14] sm:$0xf0]  ;;  %v2044_v30 = vld [vmem:[#allocation2 + $0x124] sm:$0xf0] }
  0x22   : > { %v1702_v25 = vld [vmem:[#allocation2 + $0x90] sm:$0xf]  ;;  %v1639_v26 = vor.u32 %v2010_v24, %v1638_v23  ;;  %v2026_v27 = vld [vmem:[#allocation2 + $0x94] sm:$0xf0]  ;;  %v1838_v31 = vld [vmem:[#allocation2 + $0x1a0] sm:$0xf]  ;;  %v1775_v32 = vor.u32 %v2044_v30, %v1774_v29 }
  0x23   : > { %v1703_v28 = vor.u32 %v2026_v27, %v1702_v25  ;;  %v2060_v33 = vld [vmem:[#allocation2 + $0x1a4] sm:$0xf0]  ;;  %v1630_v35 = vld [vmem:[#allocation2] sm:$0xf]  ;;  %v1766_v41 = vld [vmem:[#allocation2 + $0x110] sm:$0xf] }
  0x24   : > { %1004 = vmatpush.bf16.msrb.mxu2 %v1791_v8  ;;  %1022 = vmatpush.bf16.msrb.mxu3 %v1855_v10  ;;  %v1839_v34 = vor.u32 %v2060_v33, %v1838_v31  ;;  %v2008_v36 = vld [vmem:[#allocation2 + $0x4] sm:$0xf0]  ;;  %v1694_v37 = vld [vmem:[#allocation2 + $0x80] sm:$0xf]  ;;  %v2042_v42 = vld [vmem:[#allocation2 + $0x114] sm:$0xf0] }
  0x25   : > { %969 = vmatpush.bf16.msrb.mxu0 %v1655_v2  ;;  %987 = vmatpush.bf16.msrb.mxu1 %v1719_v4  ;;  %v2024_v39 = vld [vmem:[#allocation2 + $0x84] sm:$0xf0]  ;;  %v1830_v43 = vld [vmem:[#allocation2 + $0x190] sm:$0xf]  ;;  %v1767_v44 = vor.u32 %v2042_v42, %v1766_v41  ;;  %v2058_v45 = vld [vmem:[#allocation2 + $0x194] sm:$0xf0] }
  0x26   : > { %1621 = vmatmul.msk.bf16.gmra.mxu0 %vm443_vm1, %v412_v38  ;;  %1623 = vmatmul.msk.bf16.gmra.mxu1 %vm443_vm1, %v412_v38  ;;  %v1695_v40 = vor.u32 %v2024_v39, %v1694_v37  ;;  %v1831_v46 = vor.u32 %v2058_v45, %v1830_v43  ;;  %v2021_v47 = vld [vmem:[#allocation2 + $0x74] sm:$0xf]  ;;  %v1688_v48 = vld [vmem:[#allocation2 + $0x78] sm:$0xf0]  ;;  %v1758_v53 = vld [vmem:[#allocation2 + $0x100] sm:$0xf] }
  0x27   : > { %1625 = vmatmul.msk.bf16.gmra.mxu2 %vm443_vm1, %v412_v38  ;;  %1627 = vmatmul.msk.bf16.gmra.mxu3 %vm443_vm1, %v412_v38  ;;  %v1631_v38 = vor.u32 %v2008_v36, %v1630_v35  ;;  %v2037_v49 = vld [vmem:[#allocation2 + $0xf4] sm:$0xf]  ;;  %v1691_v50 = vor.u32 %v2021_v47, %v1688_v48  ;;  %v1752_v51 = vld [vmem:[#allocation2 + $0xf8] sm:$0xf0]  ;;  %v2040_v54 = vld [vmem:[#allocation2 + $0x104] sm:$0xf0] }
  0x28   : > { %1005 = vmatpush.bf16.msrb.mxu2 %v1783_v20  ;;  %1023 = vmatpush.bf16.msrb.mxu3 %v1847_v22  ;;  %v1755_v52 = vor.u32 %v2037_v49, %v1752_v51  ;;  %v1822_v55 = vld [vmem:[#allocation2 + $0x180] sm:$0xf]  ;;  %v1759_v56 = vor.u32 %v2040_v54, %v1758_v53  ;;  %v2056_v57 = vld [vmem:[#allocation2 + $0x184] sm:$0xf0]  ;;  %v2019_v59 = vld [vmem:[#allocation2 + $0x64] sm:$0xf] }
  0x29   : > { %970 = vmatpush.bf16.msrb.mxu0 %v1647_v14  ;;  %988 = vmatpush.bf16.msrb.mxu1 %v1711_v16  ;;  %v1823_v58 = vor.u32 %v2056_v57, %v1822_v55  ;;  %v1680_v60 = vld [vmem:[#allocation2 + $0x68] sm:$0xf0]  ;;  %v2035_v61 = vld [vmem:[#allocation2 + $0xe4] sm:$0xf]  ;;  %v417_v62 = vld [vmem:[%s2479_s2] sm:$0xf] }
  0x2a   : > { %v1683_v63 = vor.u32 %v2019_v59, %v1680_v60  ;;  %v1744_v0 = vld [vmem:[#allocation2 + $0xe8] sm:$0xf0]  ;;  %v2053_v3 = vld [vmem:[#allocation2 + $0x174] sm:$0xf]  ;;  %v1816_v4 = vld [vmem:[#allocation2 + $0x178] sm:$0xf0] }
  0x2b   : > { %v1747_v2 = vor.u32 %v2035_v61, %v1744_v0  ;;  %v2069_v5 = vld [vmem:[#allocation2 + $0x1f4] sm:$0xf]  ;;  %v2354_v6 = vperm.slane %v417_v62, 0  ;;  %v2356_v7 = vperm.slane %v417_v62, 1  ;;  %v1819_v9 = vor.u32 %v2053_v3, %v1816_v4  ;;  %v1880_v10 = vld [vmem:[#allocation2 + $0x1f8] sm:$0xf0] }
  0x2c   : > { %1006 = vmatpush.bf16.msrb.mxu2 %v1775_v32  ;;  %1024 = vmatpush.bf16.msrb.mxu3 %v1839_v34  ;;  %v1883_v11 = vor.u32 %v2069_v5, %v1880_v10  ;;  %v2017_v12 = vld [vmem:[#allocation2 + $0x54] sm:$0xf]  ;;  %v1672_v13 = vld [vmem:[#allocation2 + $0x58] sm:$0xf0]  ;;  %v2051_v17 = vld [vmem:[#allocation2 + $0x164] sm:$0xf] }
  0x2d   : > { %971 = vmatpush.bf16.msrb.mxu0 %v1639_v26  ;;  %989 = vmatpush.bf16.msrb.mxu1 %v1703_v28  ;;  %v2033_v14 = vld [vmem:[#allocation2 + $0xd4] sm:$0xf]  ;;  %v1675_v15 = vor.u32 %v2017_v12, %v1672_v13  ;;  %v1736_v16 = vld [vmem:[#allocation2 + $0xd8] sm:$0xf0]  ;;  %v1808_v18 = vld [vmem:[#allocation2 + $0x168] sm:$0xf0] }
  0x2e   : > { %v1739_v19 = vor.u32 %v2033_v14, %v1736_v16  ;;  %v1811_v20 = vor.u32 %v2051_v17, %v1808_v18  ;;  %v2067_v21 = vld [vmem:[#allocation2 + $0x1e4] sm:$0xf]  ;;  %v1872_v22 = vld [vmem:[#allocation2 + $0x1e8] sm:$0xf0]  ;;  %v2049_v30 = vld [vmem:[#allocation2 + $0x154] sm:$0xf] }
  0x2f   : > { %v2015_v23 = vld [vmem:[#allocation2 + $0x44] sm:$0xf]  ;;  %v1875_v24 = vor.u32 %v2067_v21, %v1872_v22  ;;  %v1664_v25 = vld [vmem:[#allocation2 + $0x48] sm:$0xf0]  ;;  %v1800_v31 = vld [vmem:[#allocation2 + $0x158] sm:$0xf0] }
  0x30   : > { %1007 = vmatpush.bf16.msrb.mxu2 %v1767_v44  ;;  %1025 = vmatpush.bf16.msrb.mxu3 %v1831_v46  ;;  %v2031_v26 = vld [vmem:[#allocation2 + $0xc4] sm:$0xf]  ;;  %v1728_v27 = vld [vmem:[#allocation2 + $0xc8] sm:$0xf0]  ;;  %v1667_v28 = vor.u32 %v2015_v23, %v1664_v25  ;;  %v2065_v32 = vld [vmem:[#allocation2 + $0x1d4] sm:$0xf]  ;;  %v1803_v35 = vor.u32 %v2049_v30, %v1800_v31 }
  0x31   : > { %972 = vmatpush.bf16.msrb.mxu0 %v1631_v38  ;;  %990 = vmatpush.bf16.msrb.mxu1 %v1695_v40  ;;  %v1731_v29 = vor.u32 %v2031_v26, %v1728_v27  ;;  %v1864_v36 = vld [vmem:[#allocation2 + $0x1d8] sm:$0xf0]  ;;  %v2360_v41 = vperm.slane %v417_v62, 2  ;;  %v2362_v42 = vperm.slane %v417_v62, 3  ;;  %v2013_v46 = vld [vmem:[#allocation2 + $0x34] sm:$0xf] }
  0x32   : > { %v1867_v40 = vor.u32 %v2065_v32, %v1864_v36  ;;  %v1656_v47 = vld [vmem:[#allocation2 + $0x38] sm:$0xf0]  ;;  %v2029_v48 = vld [vmem:[#allocation2 + $0xb4] sm:$0xf]  ;;  %v1792_v53 = vld [vmem:[#allocation2 + $0x148] sm:$0xf0] }
  0x33   : > { %v1720_v51 = vld [vmem:[#allocation2 + $0xb8] sm:$0xf0]  ;;  %v2063_v57 = vld [vmem:[#allocation2 + $0x1c4] sm:$0xf]  ;;  %v2045_v14 = vld [vmem:[#allocation2 + $0x134] sm:$0xf] }
  0x34   : > { %1008 = vmatpush.bf16.msrb.mxu2 %v1759_v56  ;;  %1026 = vmatpush.bf16.msrb.mxu3 %v1823_v58  ;;  %v1723_v55 = vor.u32 %v2029_v48, %v1720_v51  ;;  %v1856_v58 = vld [vmem:[#allocation2 + $0x1c8] sm:$0xf0]  ;;  %v2011_v59 = vld [vmem:[#allocation2 + $0x24] sm:$0xf]  ;;  %v2061_v16 = vld [vmem:[#allocation2 + $0x1b4] sm:$0xf] }
  0x35   : > { %1037 = vmatpush.bf16.msra.mxu0 %v1691_v50  ;;  %1055 = vmatpush.bf16.msra.mxu1 %v1755_v52  ;;  %v1659_v50 = vor.u32 %v2013_v46, %v1656_v47  ;;  %v2047_v52 = vld [vmem:[#allocation2 + $0x144] sm:$0xf]  ;;  %v1859_v62 = vor.u32 %v2063_v57, %v1856_v58  ;;  %v1848_v21 = vld [vmem:[#allocation2 + $0x1b8] sm:$0xf0]  ;;  %v2009_v25 = vld [vmem:[#allocation2 + $0x14] sm:$0xf] }
  0x36   : > { %v1795_v56 = vor.u32 %v2047_v52, %v1792_v53  ;;  %v2027_v0 = vld [vmem:[#allocation2 + $0xa4] sm:$0xf]  ;;  %v1640_v26 = vld [vmem:[#allocation2 + $0x18] sm:$0xf0]  ;;  %v2025_v27 = vld [vmem:[#allocation2 + $0x94] sm:$0xf] }
  0x37   : > { %v1704_v30 = vld [vmem:[#allocation2 + $0x98] sm:$0xf0]  ;;  %v2043_v31 = vld [vmem:[#allocation2 + $0x124] sm:$0xf]  ;;  %v1776_v32 = vld [vmem:[#allocation2 + $0x128] sm:$0xf0] }
  0x38   : > { %1073 = vmatpush.bf16.msra.mxu2 %v1819_v9  ;;  %1091 = vmatpush.bf16.msra.mxu3 %v1883_v11  ;;  %v2059_v36 = vld [vmem:[#allocation2 + $0x1a4] sm:$0xf]  ;;  %v1696_v46 = vld [vmem:[#allocation2 + $0x88] sm:$0xf0]  ;;  %v2041_v51 = vld [vmem:[#allocation2 + $0x114] sm:$0xf] }
  0x39   : > { %1038 = vmatpush.bf16.msra.mxu0 %v1683_v63  ;;  %1056 = vmatpush.bf16.msra.mxu1 %v1747_v2  ;;  %v1648_v63 = vld [vmem:[#allocation2 + $0x28] sm:$0xf0]  ;;  %v1768_v52 = vld [vmem:[#allocation2 + $0x118] sm:$0xf0]  ;;  %v2057_v53 = vld [vmem:[#allocation2 + $0x194] sm:$0xf] }
  0x3a   : > { %v1651_v4 = vor.u32 %v2011_v59, %v1648_v63  ;;  %v1771_v58 = vor.u32 %v2041_v51, %v1768_v52  ;;  %v1832_v59 = vld [vmem:[#allocation2 + $0x198] sm:$0xf0] }
  0x3c   : > { %1074 = vmatpush.bf16.msra.mxu2 %v1811_v20  ;;  %1092 = vmatpush.bf16.msra.mxu3 %v1875_v24  ;;  %v1851_v24 = vor.u32 %v2061_v16, %v1848_v21 }
  0x3d   : > { %1039 = vmatpush.bf16.msra.mxu0 %v1675_v15  ;;  %1057 = vmatpush.bf16.msra.mxu1 %v1739_v19  ;;  %v1784_v15 = vld [vmem:[#allocation2 + $0x138] sm:$0xf0] }
  0x3e   : > { %v1787_v20 = vor.u32 %v2045_v14, %v1784_v15 }
  0x40   : > { %1075 = vmatpush.bf16.msra.mxu2 %v1803_v35  ;;  %1093 = vmatpush.bf16.msra.mxu3 %v1867_v40  ;;  %v1707_v35 = vor.u32 %v2025_v27, %v1704_v30 }
  0x41   : > { %1040 = vmatpush.bf16.msra.mxu0 %v1667_v28  ;;  %1058 = vmatpush.bf16.msra.mxu1 %v1731_v29  ;;  %v1643_v29 = vor.u32 %v2009_v25, %v1640_v26 }
  0x44   : > { %1076 = vmatpush.bf16.msra.mxu2 %v1795_v56  ;;  %1094 = vmatpush.bf16.msra.mxu3 %v1859_v62 }
  0x45   : > { %1041 = vmatpush.bf16.msra.mxu0 %v1659_v50  ;;  %1059 = vmatpush.bf16.msra.mxu1 %v1723_v55 }
  0x48   : > { %1077 = vmatpush.bf16.msra.mxu2 %v1787_v20  ;;  %1095 = vmatpush.bf16.msra.mxu3 %v1851_v24 }
  0x49   : > { %1042 = vmatpush.bf16.msra.mxu0 %v1651_v4 }
  0x4d   : > { %1043 = vmatpush.bf16.msra.mxu0 %v1643_v29 }
  0x93   : > { %v472_v1 = vpop.f32.mrf.mxu0  ;;  %v490_v8 = vpop.f32.mrf.mxu1 }
  0x94   : > { %v473_v33 = vadd.f32 %v472_v1, %v2354_v6  ;;  %v491_v37 = vadd.f32 %v490_v8, %v2356_v7  ;;  %v1712_v1 = vld [vmem:[#allocation2 + $0xa8] sm:$0xf0] }
  0x95   : > { %v1715_v5 = vor.u32 %v2027_v0, %v1712_v1  ;;  %v1835_v1 = vor.u32 %v2057_v53, %v1832_v59  ;;  %v2084_v53 = vld [vmem:[%s2482_s5 + $0x68] sm:$0xff] }
  0x97   : > { %1060 = vmatpush.bf16.msra.mxu1 %v1715_v5 }
  0x9a   : > { %v508_v34 = vpop.f32.mrf.mxu2  ;;  %v526_v38 = vpop.f32.mrf.mxu3 }
  0x9b   : > { %v474_v39 = vpop.f32.mrf.mxu0  ;;  %v492_v44 = vpop.f32.mrf.mxu1  ;;  %v509_v9 = vadd.f32 %v508_v34, %v2360_v41  ;;  %v527_v10 = vadd.f32 %v526_v38, %v2362_v42  ;;  %v2007_v38 = vld [vmem:[#allocation2 + $0x4] sm:$0xf]  ;;  %1061 = vmatpush.bf16.msra.mxu1 %v1707_v35  ;;  %v2074_v35 = vld [vmem:[%s2482_s5 + $0x18] sm:$0xff] }
  0x9c   : > { %v475_v43 = vadd.f32 %v474_v39, %v2354_v6  ;;  %v493_v45 = vadd.f32 %v492_v44, %v2356_v7  ;;  %v1632_v44 = vld [vmem:[#allocation2 + $0x8] sm:$0xf0] }
  0x9d   : > { %v1635_v50 = vor.u32 %v2007_v38, %v1632_v44  ;;  %v2072_v38 = vld [vmem:[%s2482_s5 + $0x8] sm:$0xff]  ;;  %v2086_v44 = vld [vmem:[%s2482_s5 + $0x78] sm:$0xff] }
  0x9e   : > { %v535_v49 = vpack.c.bf16 %v475_v43, %v473_v33  ;;  %v536_v54 = vpack.c.bf16 %v493_v45, %v491_v37  ;;  %v1840_v37 = vld [vmem:[#allocation2 + $0x1a8] sm:$0xf0]  ;;  %v1779_v43 = vor.u32 %v2043_v31, %v1776_v32  ;;  %v2023_v45 = vld [vmem:[#allocation2 + $0x84] sm:$0xf]  ;;  %v2078_v32 = vld [vmem:[%s2482_s5 + $0x38] sm:$0xff] }
  0x9f   : > { %v1699_v57 = vor.u32 %v2023_v45, %v1696_v46  ;;  %1044 = vmatpush.bf16.msra.mxu0 %v1635_v50 }
  0xa0   : > { %v543_v60 = vunpack.c.l.bf16 %v535_v49  ;;  %v547_v61 = vunpack.c.h.bf16 %v535_v49  ;;  %v544_v2 = vunpack.c.l.bf16 %v536_v54  ;;  %v548_v3 = vunpack.c.h.bf16 %v536_v54  ;;  %1078 = vmatpush.bf16.msra.mxu2 %v1779_v43 }
  0xa1   : > { %v1843_v49 = vor.u32 %v2059_v36, %v1840_v37  ;;  %1062 = vmatpush.bf16.msra.mxu1 %v1699_v57  ;;  %v2073_v36 = vld [vmem:[%s2482_s5 + $0x10] sm:$0xff] }
  0xa2   : > { %2128 = vtanh.f32 %v543_v60  ;;  %v510_v8 = vpop.f32.mrf.mxu2  ;;  %v528_v12 = vpop.f32.mrf.mxu3 }
  0xa3   : > { %2130 = vtanh.f32 %v547_v61  ;;  %v511_v11 = vadd.f32 %v510_v8, %v2360_v41  ;;  %v477_v13 = vpop.f32.mrf.mxu0  ;;  %v529_v17 = vadd.f32 %v528_v12, %v2362_v42  ;;  %v495_v19 = vpop.f32.mrf.mxu1  ;;  %1096 = vmatpush.bf16.msra.mxu3 %v1843_v49 }
  0xa4   : > { %2132 = vtanh.f32 %v544_v2  ;;  %v478_v18 = vadd.f32 %v477_v13, %v2354_v6  ;;  %v496_v23 = vadd.f32 %v495_v19, %v2356_v7  ;;  %1079 = vmatpush.bf16.msra.mxu2 %v1771_v58  ;;  %v1824_v13 = vld [vmem:[#allocation2 + $0x188] sm:$0xf0] }
  0xa5   : > { %2134 = vtanh.f32 %v548_v3  ;;  %v537_v22 = vpack.c.bf16 %v511_v11, %v509_v9  ;;  %v538_v28 = vpack.c.bf16 %v529_v17, %v527_v10  ;;  %v2039_v9 = vld [vmem:[#allocation2 + $0x104] sm:$0xf]  ;;  %v1760_v10 = vld [vmem:[#allocation2 + $0x108] sm:$0xf0] }
  0xa6   : > { %v539_v34 = vpack.c.bf16 %v478_v18, %v478_v18  ;;  %v540_v48 = vpack.c.bf16 %v496_v23, %v496_v23  ;;  %v1763_v12 = vor.u32 %v2039_v9, %v1760_v10  ;;  %v2081_v10 = vld [vmem:[%s2482_s5 + $0x50] sm:$0xff] }
  0xa7   : > { %v545_v6 = vunpack.c.l.bf16 %v537_v22  ;;  %v549_v33 = vunpack.c.h.bf16 %v537_v22  ;;  %v546_v39 = vunpack.c.l.bf16 %v538_v28  ;;  %v550_v40 = vunpack.c.h.bf16 %v538_v28  ;;  %1097 = vmatpush.bf16.msra.mxu3 %v1835_v1 }
  0xa8   : > { %v2129_v7 = vpop.eup %2128  ;;  %v551_v62 = vunpack.c.l.bf16 %v539_v34  ;;  %v552_v5 = vunpack.c.l.bf16 %v540_v48  ;;  %1080 = vmatpush.bf16.msra.mxu2 %v1763_v12  ;;  %v2075_v34 = vld [vmem:[%s2482_s5 + $0x20] sm:$0xff] }
  0xa9   : > { %v2131_v47 = vpop.eup %2130  ;;  %2136 = vtanh.f32 %v545_v6  ;;  %v2077_v6 = vld [vmem:[%s2482_s5 + $0x30] sm:$0xff] }
  0xaa   : > { %v2133_v54 = vpop.eup %2132  ;;  %2138 = vtanh.f32 %v549_v33  ;;  %v513_v55 = vpop.f32.mrf.mxu2  ;;  %v567_v56 = vpack.c.bf16 %v2131_v47, %v2129_v7  ;;  %v2076_v33 = vld [vmem:[%s2482_s5 + $0x28] sm:$0xff]  ;;  %v2085_v47 = vld [vmem:[%s2482_s5 + $0x70] sm:$0xff] }
  0xab   : > { %v2135_v60 = vpop.eup %2134  ;;  %2140 = vtanh.f32 %v546_v39  ;;  %v514_v61 = vadd.f32 %v513_v55, %v2360_v41  ;;  %v531_v63 = vpop.f32.mrf.mxu3  ;;  %v2055_v41 = vld [vmem:[#allocation2 + $0x184] sm:$0xf] }
  0xac   : > { %v479_v0 = vpop.f32.mrf.mxu0  ;;  %2142 = vtanh.f32 %v550_v40  ;;  %v532_v2 = vadd.f32 %v531_v63, %v2362_v42  ;;  %973 = vmatmul.bf16.vlgmr.msrb.gmra.mxu0 %v567_v56  ;;  %v568_v3 = vpack.c.bf16 %v2135_v60, %v2133_v54  ;;  %v497_v4 = vpop.f32.mrf.mxu1  ;;  %v1827_v42 = vor.u32 %v2055_v41, %v1824_v13  ;;  %v2071_v39 = vld [vmem:[%s2482_s5] sm:$0xff] }
  0xad   : > { %v541_v8 = vpack.c.bf16 %v514_v61, %v514_v61  ;;  %2144 = vtanh.f32 %v551_v62  ;;  %1261 = vmatpush.bf16.msrb.mxu0 %v2078_v32  ;;  %v639_v40 = vld [vmem:[%s2481_s4] sm:$0x3] }
  0xae   : > { %991 = vmatmul.bf16.vlgmr.msrb.gmra.mxu1 %v568_v3  ;;  %v542_v15 = vpack.c.bf16 %v532_v2, %v532_v2  ;;  %2146 = vtanh.f32 %v552_v5  ;;  %1098 = vmatpush.bf16.msra.mxu3 %v1827_v42  ;;  %v641_v45 = vperm.slane %v639_v40, 0  ;;  %v2082_v2 = vld [vmem:[%s2482_s5 + $0x58] sm:$0xff] }
  0xaf   : > { %v2137_v11 = vpop.eup %2136  ;;  %v553_v19 = vunpack.c.l.bf16 %v541_v8  ;;  %1279 = vmatpush.bf16.msrb.mxu1 %v2086_v44 }
  0xb0   : > { %v2139_v14 = vpop.eup %2138  ;;  %v554_v23 = vunpack.c.l.bf16 %v542_v15 }
  0xb1   : > { %v2141_v16 = vpop.eup %2140  ;;  %v569_v17 = vpack.c.bf16 %v2139_v14, %v2137_v11  ;;  %2148 = vtanh.f32 %v553_v19  ;;  %1262 = vmatpush.bf16.msrb.mxu0 %v2077_v6  ;;  %v2080_v14 = vld [vmem:[%s2482_s5 + $0x48] sm:$0xff] }
  0xb2   : > { %v2143_v18 = vpop.eup %2142  ;;  %v515_v20 = vpop.f32.mrf.mxu2  ;;  %2150 = vtanh.f32 %v554_v23 }
  0xb3   : > { %1009 = vmatmul.bf16.vlgmr.msrb.gmra.mxu2 %v569_v17  ;;  %v570_v21 = vpack.c.bf16 %v2143_v18, %v2141_v16  ;;  %v533_v22 = vpop.f32.mrf.mxu3  ;;  %v2145_v24 = vpop.eup %2144  ;;  %1280 = vmatpush.bf16.msrb.mxu1 %v2085_v47 }
  0xb4   : > { %v2147_v25 = vpop.eup %2146  ;;  %v571_v26 = vpack.c.bf16 %v2145_v24, %v2145_v24 }
  0xb5   : > { %1027 = vmatmul.bf16.vlgmr.msrb.gmra.mxu3 %v570_v21  ;;  %v572_v27 = vpack.c.bf16 %v2147_v25, %v2147_v25  ;;  %1263 = vmatpush.bf16.msrb.mxu0 %v2076_v33  ;;  %v642_v25 = vperm.slane %v639_v40, 1 }
  0xb7   : > { %v2149_v28 = vpop.eup %2148  ;;  %1281 = vmatpush.bf16.msrb.mxu1 %v2084_v53 }
  0xb8   : > { %v2151_v29 = vpop.eup %2150  ;;  %v573_v30 = vpack.c.bf16 %v2149_v28, %v2149_v28 }
  0xb9   : > { %v574_v31 = vpack.c.bf16 %v2151_v29, %v2151_v29  ;;  %1264 = vmatpush.bf16.msrb.mxu0 %v2075_v34 }
  0xbc   : > { %978 = vmatmul.bf16.gmra.mxu0 %v571_v26 }
  0xbd   : > { %1265 = vmatpush.bf16.msrb.mxu0 %v2074_v35 }
  0xbe   : > { %996 = vmatmul.bf16.gmra.mxu1 %v572_v27 }
  0xc1   : > { %1266 = vmatpush.bf16.msrb.mxu0 %v2073_v36 }
  0xc3   : > { %1014 = vmatmul.bf16.gmra.mxu2 %v573_v30 }
  0xc5   : > { %1032 = vmatmul.bf16.gmra.mxu3 %v574_v31  ;;  %1267 = vmatpush.bf16.msrb.mxu0 %v2072_v38 }
  0xc9   : > { %1268 = vmatpush.bf16.msrb.mxu0 %v2071_v39 }
  0xcc   : > { %1045 = vmatmul.bf16.vlgmr.msra.gmra.mxu0 %v567_v56  ;;  %v2083_v56 = vld [vmem:[%s2482_s5 + $0x60] sm:$0xff] }
  0xcd   : > { %1282 = vmatpush.bf16.msrb.mxu1 %v2083_v56 }
  0xce   : > { %1063 = vmatmul.bf16.vlgmr.msra.gmra.mxu1 %v568_v3 }
  0xd1   : > { %1283 = vmatpush.bf16.msrb.mxu1 %v2082_v2  ;;  %v2092_v2 = vld [vmem:[%s2484_s7 + $0x28] sm:$0xff] }
  0xd3   : > { %1081 = vmatmul.bf16.vlgmr.msra.gmra.mxu2 %v569_v17  ;;  %v2079_v17 = vld [vmem:[%s2482_s5 + $0x40] sm:$0xff] }
  0xd5   : > { %1099 = vmatmul.bf16.vlgmr.msra.gmra.mxu3 %v570_v21  ;;  %1284 = vmatpush.bf16.msrb.mxu1 %v2081_v10  ;;  %v2088_v10 = vld [vmem:[%s2484_s7 + $0x8] sm:$0xff] }
  0xd9   : > { %1285 = vmatpush.bf16.msrb.mxu1 %v2080_v14 }
  0xdc   : > { %1050 = vmatmul.bf16.gmra.mxu0 %v571_v26 }
  0xdd   : > { %1286 = vmatpush.bf16.msrb.mxu1 %v2079_v17 }
  0xde   : > { %1068 = vmatmul.bf16.gmra.mxu1 %v572_v27 }
  0xe3   : > { %1086 = vmatmul.bf16.gmra.mxu2 %v573_v30 }
  0xe5   : > { %1104 = vmatmul.bf16.gmra.mxu3 %v574_v31 }
 0x129   : > { %v974_v37 = vpop.f32.mrf.mxu0 }
 0x12a   : > { %v975_v49 = vadd.f32 %v974_v37, %v641_v45 }
 0x12b   : > { %v992_v7 = vpop.f32.mrf.mxu1 }
 0x12c   : > { %v993_v54 = vadd.f32 %v992_v7, %v975_v49 }
 0x131   : > { %v976_v43 = vpop.f32.mrf.mxu0 }
 0x132   : > { %v977_v51 = vadd.f32 %v976_v43, %v641_v45 }
 0x133   : > { %v994_v46 = vpop.f32.mrf.mxu1 }
 0x134   : > { %v995_v57 = vadd.f32 %v994_v46, %v977_v51 }
 0x136   : > { %v1010_v48 = vpop.f32.mrf.mxu2 }
 0x137   : > { %v1011_v58 = vadd.f32 %v1010_v48, %v993_v54 }
 0x138   : > { %v1028_v50 = vpop.f32.mrf.mxu3 }
 0x139   : > { %v979_v52 = vpop.f32.mrf.mxu0  ;;  %v1029_v63 = vadd.f32 %v1028_v50, %v1011_v58 }
 0x13a   : > { %v980_v60 = vadd.f32 %v979_v52, %v641_v45 }
 0x13b   : > { %v997_v55 = vpop.f32.mrf.mxu1 }
 0x13c   : > { %v998_v3 = vadd.f32 %v997_v55, %v980_v60 }
 0x13e   : > { %v1012_v59 = vpop.f32.mrf.mxu2 }
 0x13f   : > { %v1013_v61 = vadd.f32 %v1012_v59, %v995_v57 }
 0x140   : > { %v1030_v62 = vpop.f32.mrf.mxu3 }
 0x141   : > { %v1031_v0 = vadd.f32 %v1030_v62, %v1013_v61  ;;  %v981_v1 = vpop.f32.mrf.mxu0 }
 0x143   : > { %v1109_v4 = vpack.c.bf16 %v1031_v0, %v1029_v63  ;;  %v999_v5 = vpop.f32.mrf.mxu1  ;;  %v2094_v63 = vld [vmem:[%s2484_s7 + $0x38] sm:$0xff]  ;;  %v2093_v0 = vld [vmem:[%s2484_s7 + $0x30] sm:$0xff] }
 0x144   : > { %1375 = vmatpush.bf16.msrb.mxu2 %v2094_v63  ;;  %v2090_v5 = vld [vmem:[%s2484_s7 + $0x18] sm:$0xff] }
 0x145   : > { %v1113_v8 = vunpack.c.l.bf16 %v1109_v4  ;;  %v1115_v9 = vunpack.c.h.bf16 %v1109_v4 }
 0x146   : > { %v1015_v41 = vpop.f32.mrf.mxu2 }
 0x147   : > { %2152 = vtanh.f32 %v1113_v8  ;;  %v1016_v11 = vadd.f32 %v1015_v41, %v998_v3  ;;  %v2091_v3 = vld [vmem:[%s2484_s7 + $0x20] sm:$0xff]  ;;  %v2089_v8 = vld [vmem:[%s2484_s7 + $0x10] sm:$0xff] }
 0x148   : > { %2154 = vtanh.f32 %v1115_v9  ;;  %v1033_v12 = vpop.f32.mrf.mxu3  ;;  %1376 = vmatpush.bf16.msrb.mxu2 %v2093_v0  ;;  %v2087_v41 = vld [vmem:[%s2484_s7] sm:$0xff] }
 0x149   : > { %v1046_v13 = vpop.f32.mrf.mxu0  ;;  %v1034_v15 = vadd.f32 %v1033_v12, %v1016_v11 }
 0x14a   : > { %v1047_v28 = vadd.f32 %v1046_v13, %v642_v25  ;;  %v2125_v13 = vld [vmem:[%s2483_s6] ss:$0 sm:$0xff] }
 0x14b   : > { %v1064_v42 = vpop.f32.mrf.mxu1  ;;  %v1111_v19 = vpack.c.bf16 %v1034_v15, %v1034_v15 }
 0x14c   : > { %v1065_v32 = vadd.f32 %v1064_v42, %v1047_v28  ;;  %1377 = vmatpush.bf16.msrb.mxu2 %v2092_v2 }
 0x14d   : > { %v2153_v16 = vpop.eup %2152  ;;  %v1117_v24 = vunpack.c.l.bf16 %v1111_v19 }
 0x14e   : > { %v2155_v18 = vpop.eup %2154  ;;  %v1017_v20 = vpop.f32.mrf.mxu2 }
 0x14f   : > { %v1125_v21 = vpack.c.bf16 %v2155_v18, %v2153_v16  ;;  %2156 = vtanh.f32 %v1117_v24  ;;  %v2098_v18 = vld [vmem:[%s2486_s9 + $0x18] sm:$0xff] }
 0x150   : > { %v1035_v22 = vpop.f32.mrf.mxu3  ;;  %1378 = vmatpush.bf16.msrb.mxu2 %v2091_v3  ;;  %1450 = vmatpush.bf16.msrb.mxu3 %v2098_v18 }
 0x151   : > { %1269 = vmatmul.bf16.vlgmr.msrb.gmra.mxu0 %v1125_v21  ;;  %v1048_v23 = vpop.f32.mrf.mxu0 }
 0x152   : > { %v1049_v30 = vadd.f32 %v1048_v23, %v642_v25 }
 0x153   : > { %v1066_v26 = vpop.f32.mrf.mxu1 }
 0x154   : > { %v1067_v34 = vadd.f32 %v1066_v26, %v1049_v30  ;;  %1379 = vmatpush.bf16.msrb.mxu2 %v2090_v5 }
 0x155   : > { %v2157_v33 = vpop.eup %2156 }
 0x156   : > { %v1082_v27 = vpop.f32.mrf.mxu2  ;;  %v1127_v38 = vpack.c.bf16 %v2157_v33, %v2157_v33  ;;  %v2096_v33 = vld [vmem:[%s2486_s9 + $0x8] sm:$0xff] }
 0x157   : > { %v1083_v35 = vadd.f32 %v1082_v27, %v1065_v32 }
 0x158   : > { %v1100_v29 = vpop.f32.mrf.mxu3  ;;  %1380 = vmatpush.bf16.msrb.mxu2 %v2089_v8 }
 0x159   : > { %v1051_v31 = vpop.f32.mrf.mxu0  ;;  %v1101_v39 = vadd.f32 %v1100_v29, %v1083_v35 }
 0x15a   : > { %v1052_v43 = vadd.f32 %v1051_v31, %v642_v25 }
 0x15b   : > { %v1069_v6 = vpop.f32.mrf.mxu1 }
 0x15c   : > { %v1070_v47 = vadd.f32 %v1069_v6, %v1052_v43  ;;  %1381 = vmatpush.bf16.msrb.mxu2 %v2088_v10  ;;  %v2097_v6 = vld [vmem:[%s2486_s9 + $0x10] sm:$0xff] }
 0x15d   : > { %1451 = vmatpush.bf16.msrb.mxu3 %v2097_v6 }
 0x15e   : > { %v1084_v36 = vpop.f32.mrf.mxu2 }
 0x15f   : > { %v1085_v37 = vadd.f32 %v1084_v36, %v1067_v34  ;;  %v2095_v34 = vld [vmem:[%s2486_s9] sm:$0xff] }
 0x160   : > { %v1102_v7 = vpop.f32.mrf.mxu3  ;;  %1382 = vmatpush.bf16.msrb.mxu2 %v2087_v41  ;;  %v2126_v36 = vld [vmem:[%s2485_s8] ss:$0 sm:$0xff] }
 0x161   : > { %v1103_v44 = vadd.f32 %v1102_v7, %v1085_v37  ;;  %1274 = vmatmul.bf16.gmra.mxu0 %v1127_v38  ;;  %v1053_v40 = vpop.f32.mrf.mxu0  ;;  %1452 = vmatpush.bf16.msrb.mxu3 %v2096_v33 }
 0x163   : > { %v1110_v45 = vpack.c.bf16 %v1103_v44, %v1101_v39  ;;  %v1071_v46 = vpop.f32.mrf.mxu1 }
 0x165   : > { %v1114_v48 = vunpack.c.l.bf16 %v1110_v45  ;;  %v1116_v49 = vunpack.c.h.bf16 %v1110_v45  ;;  %1453 = vmatpush.bf16.msrb.mxu3 %v2095_v34 }
 0x166   : > { %v1087_v50 = vpop.f32.mrf.mxu2 }
 0x167   : > { %2158 = vtanh.f32 %v1114_v48  ;;  %v1088_v51 = vadd.f32 %v1087_v50, %v1070_v47 }
 0x168   : > { %2160 = vtanh.f32 %v1116_v49  ;;  %v1105_v52 = vpop.f32.mrf.mxu3 }
 0x169   : > { %v1106_v53 = vadd.f32 %v1105_v52, %v1088_v51 }
 0x16b   : > { %v1112_v56 = vpack.c.bf16 %v1106_v53, %v1106_v53 }
 0x16d   : > { %v2159_v54 = vpop.eup %2158  ;;  %v1118_v60 = vunpack.c.l.bf16 %v1112_v56 }
 0x16e   : > { %v2161_v55 = vpop.eup %2160  ;;  %v1089_v57 = vpop.f32.mrf.mxu2 }
 0x16f   : > { %v1126_v58 = vpack.c.bf16 %v2161_v55, %v2159_v54  ;;  %2162 = vtanh.f32 %v1118_v60  ;;  %v2127_v54 = vld [vmem:[%s2487_s10] ss:$0 sm:$0xff] }
 0x170   : > { %v1107_v59 = vpop.f32.mrf.mxu3 }
 0x171   : > { %1287 = vmatmul.bf16.vlgmr.msrb.gmra.mxu1 %v1126_v58 }
 0x175   : > { %v2163_v61 = vpop.eup %2162 }
 0x176   : > { %v1128_v62 = vpack.c.bf16 %v2163_v61, %v2163_v61 }
 0x181   : > { %1292 = vmatmul.bf16.gmra.mxu1 %v1128_v62 }
 0x1ce   : > { %v1270_v1 = vpop.f32.mrf.mxu0 }
 0x1cf   : > { %v1271_v14 = vadd.f32 %v2125_v13, %v1270_v1 }
 0x1d6   : > { %v1272_v4 = vpop.f32.mrf.mxu0 }
 0x1d7   : > { %v1273_v15 = vadd.f32 %v2125_v13, %v1272_v4 }
 0x1de   : > { %v1275_v9 = vpop.f32.mrf.mxu0 }
 0x1df   : > { %v1276_v22 = vadd.f32 %v2125_v13, %v1275_v9 }
 0x1e6   : > { %v1277_v11 = vpop.f32.mrf.mxu0 }
 0x1ee   : > { %v1288_v12 = vpop.f32.mrf.mxu1 }
 0x1ef   : > { %v1289_v16 = vadd.f32 %v1288_v12, %v1271_v14 }
 0x1f6   : > { %v1290_v42 = vpop.f32.mrf.mxu1 }
 0x1f7   : > { %v1291_v17 = vadd.f32 %v1290_v42, %v1273_v15 }
 0x1f9   : > { %v1297_v19 = vpack.c.bf16 %v1291_v17, %v1289_v16 }
 0x1fb   : > { %v1299_v20 = vunpack.c.l.bf16 %v1297_v19  ;;  %v1300_v21 = vunpack.c.h.bf16 %v1297_v19 }
 0x1fd   : > { %2164 = vtanh.f32 %v1299_v20 }
 0x1fe   : > { %2166 = vtanh.f32 %v1300_v21  ;;  %v1293_v23 = vpop.f32.mrf.mxu1 }
 0x1ff   : > { %v1294_v24 = vadd.f32 %v1293_v23, %v1276_v22 }
 0x201   : > { %v1298_v27 = vpack.c.bf16 %v1294_v24, %v1294_v24 }
 0x203   : > { %v2165_v25 = vpop.eup %2164  ;;  %v1301_v30 = vunpack.c.l.bf16 %v1298_v27 }
 0x204   : > { %v2167_v26 = vpop.eup %2166 }
 0x205   : > { %v1305_v28 = vpack.c.bf16 %v2167_v26, %v2165_v25  ;;  %2168 = vtanh.f32 %v1301_v30 }
 0x206   : > { %v1295_v29 = vpop.f32.mrf.mxu1 }
 0x207   : > { %1383 = vmatmul.bf16.vlgmr.msrb.gmra.mxu2 %v1305_v28 }
 0x20b   : > { %v2169_v31 = vpop.eup %2168 }
 0x20c   : > { %v1306_v32 = vpack.c.bf16 %v2169_v31, %v2169_v31 }
 0x217   : > { %1388 = vmatmul.bf16.gmra.mxu2 %v1306_v32 }
 0x28a   : > { %v1384_v35 = vpop.f32.mrf.mxu2 }
 0x28b   : > { %v1385_v38 = vadd.f32 %v2126_v36, %v1384_v35 }
 0x292   : > { %v1386_v37 = vpop.f32.mrf.mxu2 }
 0x293   : > { %v1387_v7 = vadd.f32 %v2126_v36, %v1386_v37 }
 0x295   : > { %v1393_v39 = vpack.c.bf16 %v1387_v7, %v1385_v38 }
 0x297   : > { %v1395_v43 = vunpack.c.l.bf16 %v1393_v39  ;;  %v1396_v44 = vunpack.c.h.bf16 %v1393_v39 }
 0x299   : > { %2170 = vtanh.f32 %v1395_v43 }
 0x29a   : > { %2172 = vtanh.f32 %v1396_v44  ;;  %v1389_v40 = vpop.f32.mrf.mxu2 }
 0x29b   : > { %v1390_v45 = vadd.f32 %v2126_v36, %v1389_v40 }
 0x29d   : > { %v1394_v48 = vpack.c.bf16 %v1390_v45, %v1390_v45 }
 0x29f   : > { %v2171_v46 = vpop.eup %2170  ;;  %v1397_v51 = vunpack.c.l.bf16 %v1394_v48 }
 0x2a0   : > { %v2173_v47 = vpop.eup %2172 }
 0x2a1   : > { %v1401_v49 = vpack.c.bf16 %v2173_v47, %v2171_v46  ;;  %2174 = vtanh.f32 %v1397_v51 }
 0x2a2   : > { %v1391_v50 = vpop.f32.mrf.mxu2 }
 0x2a3   : > { %1996 = vmatmul.msk.bf16.vlgmr.msrb.gmra.mxu3 %vm1439_vm2, %v1401_v49 }
 0x2a7   : > { %v2175_v52 = vpop.eup %2174 }
 0x2a8   : > { %v1402_v53 = vpack.c.bf16 %v2175_v52, %v2175_v52 }
 0x2b3   : > { %1997 = vmatmul.msk.bf16.gmra.mxu3 %vm1439_vm2, %v1402_v53 }
 0x326   : > { %v1455_v55 = vpop.f32.mrf.mxu3 }
 0x327   : > { %v1456_v56 = vadd.f32 %v2127_v54, %v1455_v55 }
 0x329   : > { %v1998_v57 = vmul.f32 -1.442695, %v1456_v56 }
 0x32b   : > { %2176 = vpow2.f32 %v1998_v57 }
 0x32e   : > { %v1457_v58 = vpop.f32.mrf.mxu3 }
 0x32f   : > { %v1458_v59 = vadd.f32 %v2127_v54, %v1457_v58 }
 0x331   : > { %v2177_v60 = vpop.eup %2176  ;;  %v1999_v61 = vmul.f32 -1.442695, %v1458_v59 }
 0x332   : > { %v1473_v62 = vadd.f32 1.0, %v2177_v60 }
 0x333   : > { %2178 = vpow2.f32 %v1999_v61 }
 0x334   : > { %2180 = vrcp.f32 %v1473_v62  ;;  %vm1481_vm4 = vweird.f32 %v1473_v62  ;;  %v1487_v42 = vand.u32 2147483648, %v1473_v62  ;;  %v1485_v17 = vand.u32 2147483647, %v1473_v62 }
 0x336   : > { %v1460_v63 = vpop.f32.mrf.mxu3  ;;  %v1488_v23 = vor.u32 1.1754944e-38, %v1487_v42  ;;  %vm1486_vm9 = vcmp.eq.f32.partialorder %v1485_v17, 8.507059e+37 }
 0x337   : > { %v1461_v0 = vadd.f32 %v2127_v54, %v1460_v63 }
 0x339   : > { %v2179_v1 = vpop.eup %2178  ;;  %v2000_v2 = vmul.f32 -1.442695, %v1461_v0 }
 0x33a   : > { %v2181_v3 = vpop.eup %2180  ;;  %v1474_v4 = vadd.f32 1.0, %v2179_v1 }
 0x33b   : > { %v1477_v5 = vmul.f32 %v2181_v3, %v1473_v62  ;;  %2182 = vpow2.f32 %v2000_v2  ;;  %vm1482_vm3 = vweird.f32 %v2181_v3 }
 0x33c   : > { %2184 = vrcp.f32 %v1474_v4  ;;  %v1502_v16 = vand.u32 2147483648, %v1474_v4  ;;  %v1500_v19 = vand.u32 2147483647, %v1474_v4  ;;  %vm1483_vm6 = vmor %vm1481_vm4, %vm1482_vm3  ;;  %vm1496_vm7 = vweird.f32 %v1474_v4 }
 0x33d   : > { %v1478_v8 = vsub.f32 1.0, %v1477_v5 }
 0x33e   : > { %v1462_v9 = vpop.f32.mrf.mxu3  ;;  %v1503_v24 = vor.u32 1.1754944e-38, %v1502_v16  ;;  %vm1501_vm10 = vcmp.eq.f32.partialorder %v1500_v19, 8.507059e+37 }
 0x33f   : > { %v1479_v41 = vmul.f32 %v2181_v3, %v1478_v8 }
 0x341   : > { %v2183_v10 = vpop.eup %2182  ;;  %v1480_v14 = vadd.f32 %v2181_v3, %v1479_v41 }
 0x342   : > { %v2185_v11 = vpop.eup %2184  ;;  %v1475_v12 = vadd.f32 1.0, %v2183_v10 }
 0x343   : > { %v1492_v13 = vmul.f32 %v2185_v11, %v1474_v4  ;;  %vm1497_vm5 = vweird.f32 %v2185_v11  ;;  %v1484_v20 = vsel %vm1483_vm6, %v2181_v3, %v1480_v14 }
 0x344   : > { %2186 = vrcp.f32 %v1475_v12  ;;  %vm1498_vm8 = vmor %vm1496_vm7, %vm1497_vm5  ;;  %v1489_v27 = vsel %vm1486_vm9, %v1488_v23, %v1484_v20  ;;  %v1517_v31 = vand.u32 2147483648, %v1475_v12  ;;  %v1515_v6 = vand.u32 2147483647, %v1475_v12 }
 0x345   : > { %v1493_v15 = vsub.f32 1.0, %v1492_v13  ;;  %vm1511_vm12 = vweird.f32 %v1475_v12 }
 0x346   : > { %v1518_v34 = vor.u32 1.1754944e-38, %v1517_v31  ;;  %vm1516_vm14 = vcmp.eq.f32.partialorder %v1515_v6, 8.507059e+37 }
 0x347   : > { %v1494_v18 = vmul.f32 %v2185_v11, %v1493_v15 }
 0x349   : > { %v1495_v21 = vadd.f32 %v2185_v11, %v1494_v18 }
 0x34a   : > { %v2187_v22 = vpop.eup %2186 }
 0x34b   : > { %v1499_v25 = vsel %vm1498_vm8, %v2185_v11, %v1495_v21  ;;  %v1507_v26 = vmul.f32 %v2187_v22, %v1475_v12  ;;  %vm1512_vm11 = vweird.f32 %v2187_v22 }
 0x34c   : > { %v1504_v28 = vsel %vm1501_vm10, %v1503_v24, %v1499_v25  ;;  %vm1513_vm13 = vmor %vm1511_vm12, %vm1512_vm11 }
 0x34d   : > { %v2102_v29 = vpack.c.bf16 %v1504_v28, %v1489_v27  ;;  %v1508_v30 = vsub.f32 1.0, %v1507_v26 }
 0x34f   : > { %2103 = vst [vmem:[%s405_s12] sm:$0xff] %v2102_v29   ;;  %v1509_v32 = vmul.f32 %v2187_v22, %v1508_v30 }
 0x351   : > { %v1510_v33 = vadd.f32 %v2187_v22, %v1509_v32 }
 0x353   : > { %v1514_v35 = vsel %vm1513_vm13, %v2187_v22, %v1510_v33 }
 0x354   : > { %v1519_v36 = vsel %vm1516_vm14, %v1518_v34, %v1514_v35 }
 0x355   : > { %v1523_v37 = vpack.c.bf16 %v1519_v36, %v1519_v36 }
 0x357   : > { %1526 = vst [vmem:[%s405_s12 + $0x8] sm:$0xf] %v1523_v37 }
 0x358 PF: > { %s22_s17 = sadd.s32 1, %s2228_s17  }
 0x359   : > { %p19_p7 = scmp.ge.s32.totalorder %s22_s17, 4  }
 0x35b   :  { %21 = sbr.rel (!%p19_p7) target bundleno = 1 (0x1), region = 99 }
 0x360   :  { %1549 = vsyncpa [#allocation3], 1 }
 0x361   :  { %1551 = vsyncpa [#allocation3 + $0x1], 1 }

</bundles_post_ra>
